<compile_context>
chip_gen: v5e
topology: v5e:2x2
jax: 0.10.0
libtpu: 0.0.40
codegen_flags: <defaults>
</compile_context>

<pallas_src>
import functools

import jax
import jax.numpy as jnp
from jax.experimental import pallas as pl
from jax.experimental.pallas import tpu as pltpu

NEG_SLOPE = 0.01   # torch.nn.LeakyReLU default
BN_EPS = 1e-5      # torch.nn.BatchNorm1d default
LANE = 128


def _leaky_relu(y):
    return jnp.where(y >= 0.0, y, NEG_SLOPE * y)


# ------------------------------- fused kernel --------------------------------

def make_siamese_kernel(n_shared: int, tile_b: int, hidden: int):
    """Fully fused eval-mode forward.

    Ref order:
      x (2, TILE_B, F_in)              stacked [wt; mut] batch tile (f32)
      W_0 .. W_{n_shared-1}            shared tower weights (BN-folded, bf16)
      W_cat (H, 2H)                    head-block weight [W_top | W_bot] (bf16)
      head_w (H, OUT_PAD)              final Linear weight (bf16, lane-padded)
      bias_pack (n_shared + 2, D)      all bias rows, f32 (single DMA)
      out (TILE_B, OUT_PAD)
    """

    def kernel(*refs):
        x_ref = refs[0]
        w_refs = refs[1:1 + n_shared]
        wcat_ref = refs[1 + n_shared]
        headw_ref = refs[2 + n_shared]
        bias_ref = refs[3 + n_shared]
        o_ref = refs[4 + n_shared]
        out_pad = o_ref.shape[1]

        # (2, TB, F) -> (2*TB, F): layout-trivial merge of major dims (TB % 8 == 0),
        # so both towers share one weight load and one MXU pass per layer.
        x = x_ref[...].reshape(2 * tile_b, -1)

        # Shared tower.  Eval-mode BatchNorm affines were folded into the next
        # Linear at init time, so each block is just  x = LeakyReLU(x @ W' + b').
        # nn.Dropout is identity in eval mode.
        for k in range(n_shared):
            b = bias_ref[k:k + 1, :hidden]                               # f32 (1, H)
            y = jnp.dot(x.astype(jnp.bfloat16), w_refs[k][...],
                        preferred_element_type=jnp.float32) + b
            x = _leaky_relu(y)                                           # f32 (2TB, H)

        # Head block.  combined = cat([wt_feat, mut_feat], dim=1) @ W_hb computed as
        # one lane-concatenated dot (full 2H output width on the 256-wide MXU):
        #   r = x @ [W_top | W_bot];  y = r[:TB, :H] + r[TB:, H:] + b
        r = jnp.dot(x.astype(jnp.bfloat16), wcat_ref[...],
                    preferred_element_type=jnp.float32)                  # (2TB, 2H)
        hb_b = bias_ref[n_shared:n_shared + 1, :hidden]
        h = _leaky_relu(r[:tile_b, :hidden] + r[tile_b:, hidden:] + hb_b)

        # Final Linear (head-block BN folded in), lane-padded -> lane-dense store.
        head_b = bias_ref[n_shared + 1:n_shared + 2, :out_pad]
        o_ref[...] = jnp.dot(h.astype(jnp.bfloat16), headw_ref[...],
                             preferred_element_type=jnp.float32) + head_b

        # TODO(synk): training-mode Dropout and batch-statistics BatchNorm are not
        # implemented (eval-mode forward only).

    return kernel


# ------------------------------- model forward -------------------------------

def siamese_forward(wt, mut, params):
    B, f_in = wt.shape
    hidden = params["hidden_dim"]
    out_shape = params["out_shape"]
    out_pad = params["head_w"].shape[1]
    shared_w = params["shared_w"]
    n_shared = len(shared_w)

    # Batch tile: multiple of the f32 sublane tile (8).  Large batches are split
    # over the grid ("parallel" -> sharded across v7x's two TensorCores with
    # double-buffered DMA); weights keep constant index_maps so they stay resident.
    tile_b = min(B, 256)
    assert B % tile_b == 0 and tile_b % 8 == 0, "B must be a multiple of 8"

    x = jnp.stack([wt, mut], axis=0)                    # (2, B, F): one input DMA

    inputs = [x, *shared_w, params["w_cat"], params["head_w"], params["bias_pack"]]

    in_specs = [pl.BlockSpec((2, tile_b, f_in), lambda i: (0, i, 0))]
    for arr in inputs[1:]:
        # Full-extent block + constant index_map: loaded once, no per-step re-fetch.
        in_specs.append(pl.BlockSpec(arr.shape, lambda i: (0, 0)))
    out_specs = pl.BlockSpec((tile_b, out_pad), lambda i: (i, 0))

    # Advisory cost estimate: lets XLA schedule/overlap the custom call.
    flops = 0
    for w in shared_w:
        flops += 2 * (2 * B) * w.shape[0] * w.shape[1]
    flops += 2 * (2 * B) * hidden * (2 * hidden)        # head-block lane-concat dot
    flops += 2 * B * hidden * out_pad                   # final Linear
    in_bytes = sum(int(a.size) * a.dtype.itemsize for a in inputs)
    out_bytes = B * out_pad * 4
    cost = pl.CostEstimate(flops=flops, transcendentals=0,
                           bytes_accessed=in_bytes + out_bytes)

    # Explicit scoped-VMEM budget (resident weights + double-buffered batch tiles),
    # kept <= 32 MiB so it is valid on v5e/v6e/v7x alike.
    vmem_limit = int(min(32 << 20, max(4 << 20, 4 * (in_bytes + out_bytes))))

    out = pl.pallas_call(
        make_siamese_kernel(n_shared, tile_b, hidden),
        out_shape=jax.ShapeDtypeStruct((B, out_pad), jnp.float32),
        grid=(B // tile_b,),
        in_specs=in_specs,
        out_specs=out_specs,
        compiler_params=pltpu.CompilerParams(
            dimension_semantics=("parallel",),
            vmem_limit_bytes=vmem_limit),
        cost_estimate=cost,
    )(*inputs)
    return out[:, :out_shape]


# ------------------------------ parameter setup ------------------------------

def _init_linear(key, d_in, d_out):
    k_w, k_b = jax.random.split(key)
    w = jax.random.normal(k_w, (d_in, d_out), jnp.float32) * 0.05   # Linear.weight.T
    b = jax.random.normal(k_b, (1, d_out), jnp.float32) * 0.05      # Linear.bias
    return w, b


def _init_bn_affine(key, d):
    """Eval-mode BatchNorm1d folded to a per-feature affine (scale, shift)."""
    k_g, k_bt, k_m, k_v = jax.random.split(key, 4)
    gamma = 1.0 + 0.1 * jax.random.normal(k_g, (1, d), jnp.float32)
    beta = 0.1 * jax.random.normal(k_bt, (1, d), jnp.float32)
    mean = 0.1 * jax.random.normal(k_m, (1, d), jnp.float32)
    var = 1.0 + 0.1 * jax.random.uniform(k_v, (1, d), jnp.float32)
    scale = gamma / jnp.sqrt(var + BN_EPS)
    shift = beta - mean * scale
    return scale, shift


def init_siamese_params(key, in_shape, hidden, out_shape, n_layers):
    """Synthetic params matching the torch module, with every eval-BN affine folded
    into the subsequent Linear and all bias rows packed into one array."""
    n_shared = n_layers + 1
    keys = jax.random.split(key, 2 * n_shared + 3)

    # raw shared blocks: Linear + BN affine
    dims = [in_shape] + [hidden] * n_shared
    raw_w, raw_b, raw_scale, raw_shift = [], [], [], []
    for k in range(n_shared):
        w, b = _init_linear(keys[2 * k], dims[k], hidden)
        s, sh = _init_bn_affine(keys[2 * k + 1], hidden)
        raw_w.append(w); raw_b.append(b); raw_scale.append(s); raw_shift.append(sh)

    # head block Linear(2H -> H) + BN, final Linear(H -> out)
    hb_w, hb_b = _init_linear(keys[2 * n_shared], 2 * hidden, hidden)
    hb_scale, hb_shift = _init_bn_affine(keys[2 * n_shared + 1], hidden)
    head_w, head_b = _init_linear(keys[2 * n_shared + 2], hidden, out_shape)

    # ---- fold each eval-BN affine into the NEXT Linear ----
    shared_w, shared_b = [raw_w[0]], [raw_b[0]]
    for k in range(1, n_shared):
        s, sh = raw_scale[k - 1], raw_shift[k - 1]
        shared_w.append(s.reshape(-1, 1) * raw_w[k])
        shared_b.append(raw_b[k] + sh @ raw_w[k])
    # last shared BN folds into both halves of the head-block Linear (shared tower)
    s, sh = raw_scale[-1], raw_shift[-1]
    w_top = s.reshape(-1, 1) * hb_w[:hidden]
    w_bot = s.reshape(-1, 1) * hb_w[hidden:]
    hb_b_f = hb_b + sh @ hb_w[:hidden] + sh @ hb_w[hidden:]
    w_cat = jnp.concatenate([w_top, w_bot], axis=1)          # (H, 2H) lane-concat dot
    # head-block BN folds into the final Linear
    head_w_f = hb_scale.reshape(-1, 1) * head_w
    head_b_f = head_b + hb_shift @ head_w

    # lane-pad the final Linear to a multiple of 128 output lanes (lane-dense store)
    out_pad = ((out_shape + LANE - 1) // LANE) * LANE
    head_w_p = jnp.zeros((hidden, out_pad), jnp.float32).at[:, :out_shape].set(head_w_f)
    head_b_p = jnp.zeros((1, out_pad), jnp.float32).at[:, :out_shape].set(head_b_f)

    # pack all small bias rows into ONE (n_vec, D) array -> single DMA
    D = max(hidden, out_pad)
    bias_pack = jnp.zeros((n_shared + 2, D), jnp.float32)
    for k in range(n_shared):
        bias_pack = bias_pack.at[k, :hidden].set(shared_b[k][0])
    bias_pack = bias_pack.at[n_shared, :hidden].set(hb_b_f[0])
    bias_pack = bias_pack.at[n_shared + 1, :out_pad].set(head_b_p[0])

    return {
        # bf16 weights (MXU operands); f32 accumulation happens in the kernel.
        "shared_w": [w.astype(jnp.bfloat16) for w in shared_w],
        "w_cat": w_cat.astype(jnp.bfloat16),
        "head_w": head_w_p.astype(jnp.bfloat16),
        "bias_pack": bias_pack,
        "hidden_dim": hidden,
        "out_shape": out_shape,
    }


# ------------------------------------ main ------------------------------------

if __name__ == "__main__":
    # Small shapes consistent with the module (ModelParams scaled down), chosen as
    # multiples of 128 lanes / 8 sublanes so all vregs are full width.
    B = 8            # batch
    IN_SHAPE = 128   # params.in_shape (scaled down from 768)
    HIDDEN = 128     # params.hidden_dim (scaled down from 256)
    OUT_SHAPE = 1    # params.out_shape
    N_LAYERS = 1     # params.n_layers

    root = jax.random.PRNGKey(0)
    k_params, k_wt, k_mut = jax.random.split(root, 3)

    params = init_siamese_params(k_params, IN_SHAPE, HIDDEN, OUT_SHAPE, N_LAYERS)
    wt = jax.random.normal(k_wt, (B, IN_SHAPE), jnp.float32)
    mut = jax.random.normal(k_mut, (B, IN_SHAPE), jnp.float32)

    fwd = jax.jit(functools.partial(siamese_forward, params=params))
    out = fwd(wt, mut)
    jax.block_until_ready(out)

    assert out.shape == (B, OUT_SHAPE), out.shape
    assert out.dtype == jnp.float32, out.dtype
    print("KERNEL_OK")
</pallas_src>

<mosaic_0001>
module attributes {stable_mosaic.version = 11 : i64} {
  func.func @kernel(%arg0: i32, %arg1: memref<2x8x128xf32, #tpu.memory_space<vmem>>, %arg2: memref<128x128xbf16, #tpu.memory_space<vmem>>, %arg3: memref<128x128xbf16, #tpu.memory_space<vmem>>, %arg4: memref<128x256xbf16, #tpu.memory_space<vmem>>, %arg5: memref<128x128xbf16, #tpu.memory_space<vmem>>, %arg6: memref<4x128xf32, #tpu.memory_space<vmem>>, %arg7: memref<8x128xf32, #tpu.memory_space<vmem>>) attributes {dimension_semantics = [#tpu.dimension_semantics<parallel>], iteration_bounds = array<i64: 1>, scalar_prefetch = 0 : i64, scratch_operands = 0 : i64, tpu.core_type = #tpu.core_type<tc>, window_params = [{transform_indices = @transform_0, window_bounds = array<i64: 2, 8, 128>}, {pipeline_mode = #tpu.pipeline_mode<synchronous>, transform_indices = @transform_1, window_bounds = array<i64: 128, 128>}, {pipeline_mode = #tpu.pipeline_mode<synchronous>, transform_indices = @transform_2, window_bounds = array<i64: 128, 128>}, {pipeline_mode = #tpu.pipeline_mode<synchronous>, transform_indices = @transform_3, window_bounds = array<i64: 128, 256>}, {pipeline_mode = #tpu.pipeline_mode<synchronous>, transform_indices = @transform_4, window_bounds = array<i64: 128, 128>}, {pipeline_mode = #tpu.pipeline_mode<synchronous>, transform_indices = @transform_5, window_bounds = array<i64: 4, 128>}, {transform_indices = @transform_6, window_bounds = array<i64: 8, 128>}]} {
    %c0 = arith.constant 0 : index
    %c0_0 = arith.constant 0 : index
    %c0_1 = arith.constant 0 : index
    %0 = vector.load %arg1[%c0, %c0_0, %c0_1] : memref<2x8x128xf32, #tpu.memory_space<vmem>>, vector<2x8x128xf32>
    %1 = vector.shape_cast %0 : vector<2x8x128xf32> to vector<16x128xf32>
    %c0_2 = arith.constant 0 : index
    %c0_3 = arith.constant 0 : index
    %2 = vector.load %arg6[%c0_2, %c0_3] : memref<4x128xf32, #tpu.memory_space<vmem>>, vector<1x128xf32>
    %3 = arith.truncf %1 : vector<16x128xf32> to vector<16x128xbf16>
    %c0_4 = arith.constant 0 : index
    %c0_5 = arith.constant 0 : index
    %4 = vector.load %arg2[%c0_4, %c0_5] : memref<128x128xbf16, #tpu.memory_space<vmem>>, vector<128x128xbf16>
    %cst = arith.constant dense<0.000000e+00> : vector<16x128xf32>
    %5 = tpu.matmul %3, %4, %cst {dimension_numbers = #tpu.dot_dimension_numbers<[1], [0], [0], [1], [0, 0, 1, 1], [], []>} : vector<16x128xbf16>, vector<128x128xbf16>, vector<16x128xf32> -> vector<16x128xf32>
    %6 = vector.broadcast %2 : vector<1x128xf32> to vector<16x128xf32>
    %7 = arith.addf %5, %6 : vector<16x128xf32>
    %cst_6 = arith.constant 0.000000e+00 : f32
    %8 = vector.broadcast %cst_6 : f32 to vector<16x128xf32>
    %9 = arith.cmpf oge, %7, %8 : vector<16x128xf32>
    %cst_7 = arith.constant 0.00999999977 : f32
    %10 = vector.broadcast %cst_7 : f32 to vector<16x128xf32>
    %11 = arith.mulf %10, %7 : vector<16x128xf32>
    %12 = arith.select %9, %7, %11 : vector<16x128xi1>, vector<16x128xf32>
    %c1 = arith.constant 1 : index
    %c0_8 = arith.constant 0 : index
    %13 = vector.load %arg6[%c1, %c0_8] : memref<4x128xf32, #tpu.memory_space<vmem>>, vector<1x128xf32>
    %14 = arith.truncf %12 : vector<16x128xf32> to vector<16x128xbf16>
    %c0_9 = arith.constant 0 : index
    %c0_10 = arith.constant 0 : index
    %15 = vector.load %arg3[%c0_9, %c0_10] : memref<128x128xbf16, #tpu.memory_space<vmem>>, vector<128x128xbf16>
    %cst_11 = arith.constant dense<0.000000e+00> : vector<16x128xf32>
    %16 = tpu.matmul %14, %15, %cst_11 {dimension_numbers = #tpu.dot_dimension_numbers<[1], [0], [0], [1], [0, 0, 1, 1], [], []>} : vector<16x128xbf16>, vector<128x128xbf16>, vector<16x128xf32> -> vector<16x128xf32>
    %17 = vector.broadcast %13 : vector<1x128xf32> to vector<16x128xf32>
    %18 = arith.addf %16, %17 : vector<16x128xf32>
    %cst_12 = arith.constant 0.000000e+00 : f32
    %19 = vector.broadcast %cst_12 : f32 to vector<16x128xf32>
    %20 = arith.cmpf oge, %18, %19 : vector<16x128xf32>
    %cst_13 = arith.constant 0.00999999977 : f32
    %21 = vector.broadcast %cst_13 : f32 to vector<16x128xf32>
    %22 = arith.mulf %21, %18 : vector<16x128xf32>
    %23 = arith.select %20, %18, %22 : vector<16x128xi1>, vector<16x128xf32>
    %24 = arith.truncf %23 : vector<16x128xf32> to vector<16x128xbf16>
    %c0_14 = arith.constant 0 : index
    %c0_15 = arith.constant 0 : index
    %25 = vector.load %arg4[%c0_14, %c0_15] : memref<128x256xbf16, #tpu.memory_space<vmem>>, vector<128x256xbf16>
    %cst_16 = arith.constant dense<0.000000e+00> : vector<16x256xf32>
    %26 = tpu.matmul %24, %25, %cst_16 {dimension_numbers = #tpu.dot_dimension_numbers<[1], [0], [0], [1], [0, 0, 1, 1], [], []>} : vector<16x128xbf16>, vector<128x256xbf16>, vector<16x256xf32> -> vector<16x256xf32>
    %c2 = arith.constant 2 : index
    %c0_17 = arith.constant 0 : index
    %27 = vector.load %arg6[%c2, %c0_17] : memref<4x128xf32, #tpu.memory_space<vmem>>, vector<1x128xf32>
    %28 = vector.extract_strided_slice %26 {offsets = [0, 0], sizes = [8, 128], strides = [1, 1]} : vector<16x256xf32> to vector<8x128xf32>
    %29 = vector.extract_strided_slice %26 {offsets = [8, 128], sizes = [8, 128], strides = [1, 1]} : vector<16x256xf32> to vector<8x128xf32>
    %30 = arith.addf %28, %29 : vector<8x128xf32>
    %31 = vector.broadcast %27 : vector<1x128xf32> to vector<8x128xf32>
    %32 = arith.addf %30, %31 : vector<8x128xf32>
    %cst_18 = arith.constant 0.000000e+00 : f32
    %33 = vector.broadcast %cst_18 : f32 to vector<8x128xf32>
    %34 = arith.cmpf oge, %32, %33 : vector<8x128xf32>
    %cst_19 = arith.constant 0.00999999977 : f32
    %35 = vector.broadcast %cst_19 : f32 to vector<8x128xf32>
    %36 = arith.mulf %35, %32 : vector<8x128xf32>
    %37 = arith.select %34, %32, %36 : vector<8x128xi1>, vector<8x128xf32>
    %c3 = arith.constant 3 : index
    %c0_20 = arith.constant 0 : index
    %38 = vector.load %arg6[%c3, %c0_20] : memref<4x128xf32, #tpu.memory_space<vmem>>, vector<1x128xf32>
    %39 = arith.truncf %37 : vector<8x128xf32> to vector<8x128xbf16>
    %c0_21 = arith.constant 0 : index
    %c0_22 = arith.constant 0 : index
    %40 = vector.load %arg5[%c0_21, %c0_22] : memref<128x128xbf16, #tpu.memory_space<vmem>>, vector<128x128xbf16>
    %cst_23 = arith.constant dense<0.000000e+00> : vector<8x128xf32>
    %41 = tpu.matmul %39, %40, %cst_23 {dimension_numbers = #tpu.dot_dimension_numbers<[1], [0], [0], [1], [0, 0, 1, 1], [], []>} : vector<8x128xbf16>, vector<128x128xbf16>, vector<8x128xf32> -> vector<8x128xf32>
    %42 = vector.broadcast %38 : vector<1x128xf32> to vector<8x128xf32>
    %43 = arith.addf %41, %42 : vector<8x128xf32>
    %c0_24 = arith.constant 0 : index
    %c0_25 = arith.constant 0 : index
    %44 = vector.load %arg7[%c0_24, %c0_25] : memref<8x128xf32, #tpu.memory_space<vmem>>, vector<8x128xf32>
    tpu.vector_store %arg7[%c0_24, %c0_25], %43 {strides = array<i32>} : memref<8x128xf32, #tpu.memory_space<vmem>>, vector<8x128xf32>,
    return
  }
  func.func @transform_0(%arg0: i32) -> (i32, i32, i32) {
    %c0_i32 = arith.constant 0 : i32
    %c0_i32_0 = arith.constant 0 : i32
    %c0_i32_1 = arith.constant 0 : i32
    return %c0_i32, %arg0, %c0_i32_0 : i32, i32, i32
  }
  func.func @transform_1(%arg0: i32) -> (i32, i32) {
    %c0_i32 = arith.constant 0 : i32
    %c0_i32_0 = arith.constant 0 : i32
    %c0_i32_1 = arith.constant 0 : i32
    return %c0_i32, %c0_i32_0 : i32, i32
  }
  func.func @transform_2(%arg0: i32) -> (i32, i32) {
    %c0_i32 = arith.constant 0 : i32
    %c0_i32_0 = arith.constant 0 : i32
    %c0_i32_1 = arith.constant 0 : i32
    return %c0_i32, %c0_i32_0 : i32, i32
  }
  func.func @transform_3(%arg0: i32) -> (i32, i32) {
    %c0_i32 = arith.constant 0 : i32
    %c0_i32_0 = arith.constant 0 : i32
    %c0_i32_1 = arith.constant 0 : i32
    return %c0_i32, %c0_i32_0 : i32, i32
  }
  func.func @transform_4(%arg0: i32) -> (i32, i32) {
    %c0_i32 = arith.constant 0 : i32
    %c0_i32_0 = arith.constant 0 : i32
    %c0_i32_1 = arith.constant 0 : i32
    return %c0_i32, %c0_i32_0 : i32, i32
  }
  func.func @transform_5(%arg0: i32) -> (i32, i32) {
    %c0_i32 = arith.constant 0 : i32
    %c0_i32_0 = arith.constant 0 : i32
    %c0_i32_1 = arith.constant 0 : i32
    return %c0_i32, %c0_i32_0 : i32, i32
  }
  func.func @transform_6(%arg0: i32) -> (i32, i32) {
    %c0_i32 = arith.constant 0 : i32
    %c0_i32_0 = arith.constant 0 : i32
    return %arg0, %c0_i32 : i32, i32
  }
}

</mosaic_0001>

<bundles_post_ra>
// kernel: siamese_forward.1
= control target key start
LH: loop header
LB: loop body
LE: loop exit
PB: predicated region body
PF: predicated region fallthrough
CT: control target
= control target key end

     0   :  { %11 = vsyncpa [#allocation3], 0  ;;  %s870_s0 = inlined_call_operand.vmem [shape: f32[2,8,128], index: 0, kind: input, shape index: {}]   ;;  %s871_s1 = inlined_call_operand.hbm [shape: bf16[128,128], index: 1, kind: input, shape index: {}]   ;;  %s872_s2 = inlined_call_operand.hbm [shape: bf16[128,128], index: 2, kind: input, shape index: {}]   ;;  %s873_s3 = inlined_call_operand.hbm [shape: bf16[128,256], index: 3, kind: input, shape index: {}]   ;;  %s874_s4 = inlined_call_operand.hbm [shape: bf16[128,128], index: 4, kind: input, shape index: {}]   ;;  %s875_s5 = inlined_call_operand.vmem [shape: f32[4,128], index: 5, kind: input, shape index: {}]   ;;  %s876_s6 = inlined_call_operand.vmem [shape: f32[8,128], index: 6, kind: output, shape index: {}]  }
   0x1   :  { %12 = vsyncpa [#allocation5], 0 }
   0x2   :  { %13 = vsyncpa [#allocation8], 0  ;;  %s33_s23 = sshll.u32 %s872_s2, 4  ;;  %s794_s24 = smov [#allocation4]   ;;  %s34_s23 = int_to_ptr.hbm [resolvable:$true] %s33_s23 }
   0x3   :  { %s35_s25 = sshll.u32 %s794_s24, 4  ;;  %s20_s28 = sshll.u32 %s871_s1, 4  ;;  %s36_s25 = int_to_ptr.vmem [resolvable:$true] %s35_s25  ;;  %s21_s28 = int_to_ptr.hbm [resolvable:$true] %s20_s28 }
   0x4   :  { %s795_s29 = smov 64   ;;  %s796_s30 = smov 4  }
   0x5   :  { %41 = dma.hbm_to_vmem [thread:$0]  %s34_s23, 1024, %s36_s25, [#allocation5], %s795_s29, %s795_s29, %s796_s30  }
   0x6   :  { %s797_s7 = smov [#allocation2]   ;;  %s46_s11 = sshll.u32 %s873_s3, 4  ;;  %s47_s11 = int_to_ptr.hbm [resolvable:$true] %s46_s11 }
   0x7   :  { %s22_s8 = sshll.u32 %s797_s7, 4  ;;  %s798_s2 = smov [#allocation6]   ;;  %s23_s8 = int_to_ptr.vmem [resolvable:$true] %s22_s8 }
   0x8   :  { %28 = dma.hbm_to_vmem [thread:$0]  %s21_s28, 1024, %s23_s8, [#allocation3], %s795_s29, %s795_s29, %s796_s30  }
   0x9   :  { %s48_s12 = sshll.u32 %s798_s2, 4  ;;  %s59_s1 = sshll.u32 %s874_s4, 4  ;;  %s49_s12 = int_to_ptr.vmem [resolvable:$true] %s48_s12  ;;  %s60_s1 = int_to_ptr.hbm [resolvable:$true] %s59_s1 }
   0xa   :  { %s799_s15 = smov 128   ;;  %s800_s16 = smov 8  }
   0xb   :  { %54 = dma.hbm_to_vmem [thread:$0]  %s47_s11, 2048, %s49_s12, [#allocation5], %s799_s15, %s799_s15, %s800_s16  }
   0xc   :  { %s801_s17 = smov [#allocation7]  }
   0xd   :  { %s61_s18 = sshll.u32 %s801_s17, 4  ;;  %s62_s18 = int_to_ptr.vmem [resolvable:$true] %s61_s18 }
   0xe   :  { %67 = dma.hbm_to_vmem [thread:$0]  %s60_s1, 1024, %s62_s18, [#allocation8], %s795_s29, %s795_s29, %s796_s30  }
   0xf   :  { %788 = dma.done.wait [#allocation3], 1024  }
  0x10   :  { %789 = vsyncadd [#allocation3], 4294966272 }
  0x11   :  { %790 = dma.done.wait [#allocation5], 3072  }
  0x12   :  { %791 = vsyncadd [#allocation5], 4294964224 }
  0x13   :  { %792 = dma.done.wait [#allocation8], 1024  }
  0x14   :  { %793 = vsyncadd [#allocation8], 4294966272  ;;  %v647_v0 = vld [vmem:[#allocation2 + $0x38] sm:$0xff]  ;;  %v646_v1 = vld [vmem:[#allocation2 + $0x30] sm:$0xff] }
  0x15   :  { %155 = vmatpush.bf16.msra.mxu0 %v647_v0  ;;  %v655_v2 = vld [vmem:[#allocation4 + $0x38] sm:$0xff]  ;;  %v654_v3 = vld [vmem:[#allocation4 + $0x30] sm:$0xff]  ;;  %v645_v4 = vld [vmem:[#allocation2 + $0x28] sm:$0xff] }
  0x16   :  { %242 = vmatpush.bf16.msra.mxu1 %v655_v2  ;;  %v653_v5 = vld [vmem:[#allocation4 + $0x28] sm:$0xff]  ;;  %v644_v6 = vld [vmem:[#allocation2 + $0x20] sm:$0xff]  ;;  %v643_v8 = vld [vmem:[#allocation2 + $0x18] sm:$0xff] }
  0x17   :  { %v652_v7 = vld [vmem:[#allocation4 + $0x20] sm:$0xff]  ;;  %v642_v9 = vld [vmem:[#allocation2 + $0x10] sm:$0xff]  ;;  %v641_v10 = vld [vmem:[#allocation2 + $0x8] sm:$0xff] }
  0x18   :  { %v640_v11 = vld [vmem:[#allocation2] sm:$0xff]  ;;  %v87_v13 = vld [vmem:[%s870_s0 + $0x8] sm:$0xff]  ;;  %v651_v15 = vld [vmem:[#allocation4 + $0x18] sm:$0xff] }
  0x19   :  { %156 = vmatpush.bf16.msra.mxu0 %v646_v1  ;;  %v86_v12 = vld [vmem:[%s870_s0] sm:$0xff]  ;;  %v650_v16 = vld [vmem:[#allocation4 + $0x10] sm:$0xff]  ;;  %v649_v17 = vld [vmem:[#allocation4 + $0x8] sm:$0xff] }
  0x1a   :  { %243 = vmatpush.bf16.msra.mxu1 %v654_v3  ;;  %v89_v14 = vpack.c.bf16 %v87_v13, %v86_v12  ;;  %v648_v18 = vld [vmem:[#allocation4] sm:$0xff]  ;;  %v602_v19 = vld [vmem:[#allocation6 + $0x70] sm:$0xf]  ;;  %v671_v20 = vld [vmem:[#allocation6 + $0x74] sm:$0xf0] }
  0x1b   :  { %v670_v21 = vld [vmem:[#allocation6 + $0x74] sm:$0xf]  ;;  %v603_v22 = vor.u32 %v671_v20, %v602_v19  ;;  %v604_v23 = vld [vmem:[#allocation6 + $0x78] sm:$0xf0]  ;;  %v594_v24 = vld [vmem:[#allocation6 + $0x60] sm:$0xf] }
  0x1c   :  { %v669_v25 = vld [vmem:[#allocation6 + $0x64] sm:$0xf0]  ;;  %v607_v26 = vor.u32 %v670_v21, %v604_v23  ;;  %v668_v27 = vld [vmem:[#allocation6 + $0x64] sm:$0xf]  ;;  %v596_v28 = vld [vmem:[#allocation6 + $0x68] sm:$0xf0] }
  0x1d   :  { %157 = vmatpush.bf16.msra.mxu0 %v645_v4  ;;  %359 = vmatpush.bf16.msra.mxu2 %v603_v22  ;;  %v595_v29 = vor.u32 %v669_v25, %v594_v24  ;;  %v599_v30 = vor.u32 %v668_v27, %v596_v28  ;;  %v586_v31 = vld [vmem:[#allocation6 + $0x50] sm:$0xf]  ;;  %v667_v32 = vld [vmem:[#allocation6 + $0x54] sm:$0xf0]  ;;  %v666_v33 = vld [vmem:[#allocation6 + $0x54] sm:$0xf] }
  0x1e   :  { %244 = vmatpush.bf16.msra.mxu1 %v653_v5  ;;  %372 = vmatpush.bf16.msra.mxu3 %v607_v26  ;;  %v588_v34 = vld [vmem:[#allocation6 + $0x58] sm:$0xf0]  ;;  %v587_v35 = vor.u32 %v667_v32, %v586_v31  ;;  %v578_v37 = vld [vmem:[#allocation6 + $0x40] sm:$0xf]  ;;  %v665_v38 = vld [vmem:[#allocation6 + $0x44] sm:$0xf0] }
  0x1f   :  { %v591_v36 = vor.u32 %v666_v33, %v588_v34  ;;  %v664_v39 = vld [vmem:[#allocation6 + $0x44] sm:$0xf]  ;;  %v580_v40 = vld [vmem:[#allocation6 + $0x48] sm:$0xf0]  ;;  %v579_v41 = vor.u32 %v665_v38, %v578_v37  ;;  %v688_v44 = vld [vmem:[%s875_s5] ss:$0 sm:$0xff] }
  0x20   :  { %v583_v42 = vor.u32 %v664_v39, %v580_v40  ;;  %v570_v53 = vld [vmem:[#allocation6 + $0x30] sm:$0xf]  ;;  %v663_v54 = vld [vmem:[#allocation6 + $0x34] sm:$0xf0]  ;;  %v662_v55 = vld [vmem:[#allocation6 + $0x34] sm:$0xf] }
  0x21   :  { %158 = vmatpush.bf16.msra.mxu0 %v644_v6  ;;  %360 = vmatpush.bf16.msra.mxu2 %v595_v29  ;;  %v571_v56 = vor.u32 %v663_v54, %v570_v53  ;;  %v572_v57 = vld [vmem:[#allocation6 + $0x38] sm:$0xf0]  ;;  %v562_v59 = vld [vmem:[#allocation6 + $0x20] sm:$0xf]  ;;  %v661_v60 = vld [vmem:[#allocation6 + $0x24] sm:$0xf0] }
  0x22   :  { %245 = vmatpush.bf16.msra.mxu1 %v652_v7  ;;  %373 = vmatpush.bf16.msra.mxu3 %v599_v30  ;;  %v575_v58 = vor.u32 %v662_v55, %v572_v57  ;;  %v660_v61 = vld [vmem:[#allocation6 + $0x24] sm:$0xf]  ;;  %v563_v62 = vor.u32 %v661_v60, %v562_v59  ;;  %v564_v63 = vld [vmem:[#allocation6 + $0x28] sm:$0xf0]  ;;  %v554_v1 = vld [vmem:[#allocation6 + $0x10] sm:$0xf] }
  0x23   :  { %v567_v0 = vor.u32 %v660_v61, %v564_v63  ;;  %v659_v2 = vld [vmem:[#allocation6 + $0x14] sm:$0xf0]  ;;  %v658_v3 = vld [vmem:[#allocation6 + $0x14] sm:$0xf]  ;;  %v556_v5 = vld [vmem:[#allocation6 + $0x18] sm:$0xf0] }
  0x24   :  { %v555_v4 = vor.u32 %v659_v2, %v554_v1  ;;  %v559_v6 = vor.u32 %v658_v3, %v556_v5  ;;  %v546_v7 = vld [vmem:[#allocation6] sm:$0xf]  ;;  %v679_v13 = vld [vmem:[#allocation7 + $0x38] sm:$0xff]  ;;  %v674_v28 = vld [vmem:[#allocation7 + $0x10] sm:$0xff] }
  0x25   :  { %159 = vmatpush.bf16.msra.mxu0 %v643_v8  ;;  %361 = vmatpush.bf16.msra.mxu2 %v587_v35  ;;  %v657_v8 = vld [vmem:[#allocation6 + $0x4] sm:$0xf0]  ;;  %v675_v27 = vld [vmem:[#allocation7 + $0x18] sm:$0xff]  ;;  %v672_v30 = vld [vmem:[#allocation7] sm:$0xff] }
  0x26   :  { %246 = vmatpush.bf16.msra.mxu1 %v651_v15  ;;  %374 = vmatpush.bf16.msra.mxu3 %v591_v36  ;;  %v677_v15 = vld [vmem:[#allocation7 + $0x28] sm:$0xff]  ;;  %v690_v33 = vld [vmem:[%s875_s5 + $0x2] ss:$0 sm:$0xff] }
  0x27   :  { %v673_v29 = vld [vmem:[#allocation7 + $0x8] sm:$0xff] }
  0x29   :  { %160 = vmatpush.bf16.msra.mxu0 %v642_v9  ;;  %362 = vmatpush.bf16.msra.mxu2 %v579_v41  ;;  %v656_v9 = vld [vmem:[#allocation6 + $0x4] sm:$0xf]  ;;  %v691_v41 = vld [vmem:[%s875_s5 + $0x3] ss:$0 sm:$0xff] }
  0x2a   :  { %247 = vmatpush.bf16.msra.mxu1 %v650_v16  ;;  %375 = vmatpush.bf16.msra.mxu3 %v583_v42  ;;  %v676_v16 = vld [vmem:[#allocation7 + $0x20] sm:$0xff] }
  0x2d   :  { %161 = vmatpush.bf16.msra.mxu0 %v641_v10  ;;  %363 = vmatpush.bf16.msra.mxu2 %v571_v56  ;;  %v547_v10 = vor.u32 %v657_v8, %v546_v7 }
  0x2e   :  { %248 = vmatpush.bf16.msra.mxu1 %v649_v17  ;;  %376 = vmatpush.bf16.msra.mxu3 %v575_v58 }
  0x31   :  { %162 = vmatpush.bf16.msra.mxu0 %v640_v11  ;;  %364 = vmatpush.bf16.msra.mxu2 %v563_v62  ;;  %v548_v11 = vld [vmem:[#allocation6 + $0x8] sm:$0xf0] }
  0x32   :  { %249 = vmatpush.bf16.msra.mxu1 %v648_v18  ;;  %377 = vmatpush.bf16.msra.mxu3 %v567_v0  ;;  %v551_v12 = vor.u32 %v656_v9, %v548_v11  ;;  %v689_v18 = vld [vmem:[%s875_s5 + $0x1] ss:$0 sm:$0xff] }
  0x34   :  { %163 = vmatmul.bf16.vlgmr.msra.gmra.mxu0 %v89_v14  ;;  %v678_v14 = vld [vmem:[#allocation7 + $0x30] sm:$0xff] }
  0x35   :  { %365 = vmatpush.bf16.msra.mxu2 %v555_v4  ;;  %459 = vmatpush.bf16.msrb.mxu0 %v679_v13 }
  0x36   :  { %378 = vmatpush.bf16.msra.mxu3 %v559_v6 }
  0x39   :  { %366 = vmatpush.bf16.msra.mxu2 %v547_v10  ;;  %460 = vmatpush.bf16.msrb.mxu0 %v678_v14 }
  0x3a   :  { %379 = vmatpush.bf16.msra.mxu3 %v551_v12 }
  0x3d   :  { %461 = vmatpush.bf16.msrb.mxu0 %v677_v15 }
  0x41   :  { %462 = vmatpush.bf16.msrb.mxu0 %v676_v16 }
  0x45   :  { %463 = vmatpush.bf16.msrb.mxu0 %v675_v27 }
  0x49   :  { %464 = vmatpush.bf16.msrb.mxu0 %v674_v28 }
  0x4d   :  { %465 = vmatpush.bf16.msrb.mxu0 %v673_v29 }
  0x51   :  { %466 = vmatpush.bf16.msrb.mxu0 %v672_v30 }
  0xb1   :  { %v164_v43 = vpop.f32.mrf.mxu0 }
  0xb2   :  { %v165_v45 = vadd.f32 %v688_v44, %v164_v43 }
  0xb4   :  { %v171_v47 = vmul.f32 0.01, %v165_v45  ;;  %vm169_vm0 = vcmp.ge.f32.partialorder %v165_v45, 0.0 }
  0xb6   :  { %v173_v50 = vsel %vm169_vm0, %v165_v45, %v171_v47 }
  0xb9   :  { %v166_v46 = vpop.f32.mrf.mxu0 }
  0xba   :  { %v167_v48 = vadd.f32 %v688_v44, %v166_v46 }
  0xbc   :  { %v172_v49 = vmul.f32 0.01, %v167_v48  ;;  %vm170_vm1 = vcmp.ge.f32.partialorder %v167_v48, 0.0 }
  0xbe   :  { %v174_v51 = vsel %vm170_vm1, %v167_v48, %v172_v49 }
  0xbf   :  { %v176_v52 = vpack.c.bf16 %v174_v51, %v173_v50 }
  0xc1   :  { %250 = vmatmul.bf16.vlgmr.msra.gmra.mxu1 %v176_v52 }
 0x13e   :  { %v251_v17 = vpop.f32.mrf.mxu1 }
 0x13f   :  { %v252_v19 = vadd.f32 %v689_v18, %v251_v17 }
 0x141   :  { %v258_v21 = vmul.f32 0.01, %v252_v19  ;;  %vm256_vm2 = vcmp.ge.f32.partialorder %v252_v19, 0.0 }
 0x143   :  { %v260_v24 = vsel %vm256_vm2, %v252_v19, %v258_v21 }
 0x146   :  { %v253_v20 = vpop.f32.mrf.mxu1 }
 0x147   :  { %v254_v22 = vadd.f32 %v689_v18, %v253_v20 }
 0x149   :  { %v259_v23 = vmul.f32 0.01, %v254_v22  ;;  %vm257_vm3 = vcmp.ge.f32.partialorder %v254_v22, 0.0 }
 0x14b   :  { %v261_v25 = vsel %vm257_vm3, %v254_v22, %v259_v23 }
 0x14c   :  { %v262_v26 = vpack.c.bf16 %v261_v25, %v260_v24 }
 0x14e   :  { %367 = vmatmul.bf16.vlgmr.msra.gmra.mxu2 %v262_v26  ;;  %380 = vmatmul.bf16.vlgmr.msra.gmra.mxu3 %v262_v26 }
 0x1d1   :  { %v368_v31 = vpop.f32.mrf.mxu2  ;;  %v381_v32 = vpop.f32.mrf.mxu3 }
 0x1d9   :  { %v370_v34 = vpop.f32.mrf.mxu2  ;;  %v382_v35 = vpop.f32.mrf.mxu3 }
 0x1da   :  { %v386_v36 = vadd.f32 %v382_v35, %v368_v31 }
 0x1dc   :  { %v388_v37 = vadd.f32 %v690_v33, %v386_v36 }
 0x1de   :  { %v390_v38 = vmul.f32 0.01, %v388_v37  ;;  %vm389_vm4 = vcmp.ge.f32.partialorder %v388_v37, 0.0 }
 0x1e0   :  { %v391_v39 = vsel %vm389_vm4, %v388_v37, %v390_v38 }
 0x1e1   :  { %v393_v40 = vpack.c.bf16 %v391_v39, %v391_v39 }
 0x1e3   :  { %467 = vmatmul.bf16.vlgmr.msrb.gmra.mxu0 %v393_v40 }
 0x260   :  { %v468_v42 = vpop.f32.mrf.mxu0 }
 0x261   :  { %v469_v43 = vadd.f32 %v691_v41, %v468_v42 }
 0x263   :  { %472 = vst [vmem:[%s876_s6] sm:$0xff] %v469_v43 }
 0x268   :  { %v470_v44 = vpop.f32.mrf.mxu0 }
 0x269   :  { %477 = vsyncpa [#allocation3], 1 }
 0x26a   :  { %478 = vsyncpa [#allocation5], 1 }
 0x26b   :  { %479 = vsyncpa [#allocation8], 1 }

</bundles_post_ra>
